<compile_context>
chip_gen: v5e
topology: v5e:2x2
jax: 0.10.0
libtpu: 0.0.40
codegen_flags: <defaults>
</compile_context>

<pallas_src>
import functools

import jax
import jax.numpy as jnp
from jax.experimental import pallas as pl
from jax.experimental.pallas import tpu as pltpu

LN_EPS = 1e-5


def _round_up(v, m):
    return (v + m - 1) // m * m


def _modproj_kernel(x_ref, gamma_ref, beta_ref, w_ref, b_ref, o_ref):
    # x_ref: (tm, d_mod); gamma/beta: (1, d_mod); w: (d_mod, tn); b: (1, tn); o: (tm, tn)
    x = x_ref[...].astype(jnp.float32)

    # LayerNorm over the feature axis (biased variance, eps=1e-5), in f32.
    mean = jnp.mean(x, axis=-1, keepdims=True)
    xc = x - mean
    var = jnp.mean(xc * xc, axis=-1, keepdims=True)
    inv = jax.lax.rsqrt(var + LN_EPS)
    gamma = gamma_ref[...].astype(jnp.float32)
    beta = beta_ref[...].astype(jnp.float32)
    xn = xc * (inv * gamma) + beta  # fused affine

    # Matmul in the weight's native dtype (native bf16 MXU path when the model
    # is bf16); accumulate in f32 via preferred_element_type.
    y = jnp.dot(xn.astype(w_ref.dtype), w_ref[...],
                preferred_element_type=jnp.float32)
    y = y + b_ref[...].astype(jnp.float32)

    # Dropout (eval mode) == identity.
    o_ref[...] = y.astype(o_ref.dtype)


@functools.partial(jax.jit, static_argnames=("tm", "tn"))
def modality_projection(x, gamma, beta, w_t, b, *, tm=256, tn=256):
    """x: [..., d_mod] -> [..., d_out]; w_t is the transposed Linear weight (d_mod, d_out)."""
    *lead, d_mod = x.shape
    d_out = w_t.shape[1]
    n_rows = 1
    for s in lead:
        n_rows *= s

    x2 = x.reshape(n_rows, d_mod)
    gamma2 = gamma.reshape(1, d_mod)
    beta2 = beta.reshape(1, d_mod)
    b2 = b.reshape(1, d_out)

    # Row tile: multiple of 8 (sublanes). Column tile: multiple of 128 (lanes)
    # so the output stores are lane-dense unmasked vst.
    tm_eff = min(_round_up(tm, 8), _round_up(n_rows, 8))
    tn_eff = min(_round_up(tn, 128), _round_up(d_out, 128))

    rows_p = _round_up(n_rows, tm_eff)
    d_out_p = _round_up(d_out, tn_eff)

    if rows_p != n_rows:
        x2 = jnp.pad(x2, ((0, rows_p - n_rows), (0, 0)))
    if d_out_p != d_out:
        w_t = jnp.pad(w_t, ((0, 0), (0, d_out_p - d_out)))
        b2 = jnp.pad(b2, ((0, 0), (0, d_out_p - d_out)))

    grid = (rows_p // tm_eff, d_out_p // tn_eff)

    out2 = pl.pallas_call(
        _modproj_kernel,
        out_shape=jax.ShapeDtypeStruct((rows_p, d_out_p), x.dtype),
        grid_spec=pltpu.PrefetchScalarGridSpec(
            num_scalar_prefetch=0,
            grid=grid,
            in_specs=[
                pl.BlockSpec((tm_eff, d_mod), lambda i, j: (i, 0)),   # x row tile
                pl.BlockSpec((1, d_mod), lambda i, j: (0, 0)),        # gamma
                pl.BlockSpec((1, d_mod), lambda i, j: (0, 0)),        # beta
                pl.BlockSpec((d_mod, tn_eff), lambda i, j: (0, j)),   # W^T column tile
                pl.BlockSpec((1, tn_eff), lambda i, j: (0, j)),       # bias column tile
            ],
            out_specs=pl.BlockSpec((tm_eff, tn_eff), lambda i, j: (i, j)),
        ),
        compiler_params=pltpu.CompilerParams(
            dimension_semantics=("parallel", "parallel"),
            vmem_limit_bytes=48 * 1024 * 1024,
        ),
    )(x2, gamma2, beta2, w_t, b2)

    out2 = out2[:n_rows, :d_out]
    return out2.reshape(*lead, d_out)


def _reference(x, gamma, beta, w_t, b):
    xf = x.astype(jnp.float32)
    mean = jnp.mean(xf, axis=-1, keepdims=True)
    var = jnp.mean((xf - mean) ** 2, axis=-1, keepdims=True)
    xn = (xf - mean) * jax.lax.rsqrt(var + LN_EPS) * gamma + beta
    return (xn @ w_t + b).astype(x.dtype)


if __name__ == "__main__":
    key = jax.random.PRNGKey(0)

    # Case 1: the module's toy shapes (batch=2, seq=8, d_mod=32, d_out=32).
    # Case 2: odd shapes that exercise both the row padding and the d_out
    #         padding paths (batch=2, seq=7, d_mod=48, d_out=96).
    for (B, S, d_mod, d_out) in [(2, 8, 32, 32), (2, 7, 48, 96)]:
        key, kx, kw, kb = jax.random.split(key, 4)
        x = jax.random.normal(kx, (B, S, d_mod), dtype=jnp.float32)

        # Deterministic nn.Linear-like uniform init; LayerNorm affine = 1/0.
        bound = 1.0 / (d_mod ** 0.5)
        w = jax.random.uniform(kw, (d_out, d_mod), minval=-bound, maxval=bound,
                               dtype=jnp.float32)      # PyTorch layout (d_out, d_mod)
        b = jax.random.uniform(kb, (d_out,), minval=-bound, maxval=bound,
                               dtype=jnp.float32)
        gamma = jnp.ones((d_mod,), dtype=jnp.float32)
        beta = jnp.zeros((d_mod,), dtype=jnp.float32)
        w_t = w.T  # (d_mod, d_out) for the kernel's row-major matmul

        out = jax.block_until_ready(modality_projection(x, gamma, beta, w_t, b))
        ref = _reference(x, gamma, beta, w_t, b)

        assert out.shape == (B, S, d_out)
        assert jnp.allclose(out, ref, atol=1e-4, rtol=1e-4), \
            f"mismatch vs reference for shape {(B, S, d_mod, d_out)}"

    print("KERNEL_OK")
</pallas_src>

<mosaic_0001>
module attributes {stable_mosaic.version = 11 : i64} {
  func.func @_modproj_kernel(%arg0: i32, %arg1: i32, %arg2: memref<16x32xf32, #tpu.memory_space<vmem>>, %arg3: memref<1x32xf32, #tpu.memory_space<vmem>>, %arg4: memref<1x32xf32, #tpu.memory_space<vmem>>, %arg5: memref<32x128xf32, #tpu.memory_space<vmem>>, %arg6: memref<1x128xf32, #tpu.memory_space<vmem>>, %arg7: memref<16x128xf32, #tpu.memory_space<vmem>>) attributes {dimension_semantics = [#tpu.dimension_semantics<parallel>, #tpu.dimension_semantics<parallel>], iteration_bounds = array<i64: 1, 1>, scalar_prefetch = 0 : i64, scratch_operands = 0 : i64, tpu.core_type = #tpu.core_type<tc>, window_params = [{transform_indices = @transform_0, window_bounds = array<i64: 16, 32>}, {pipeline_mode = #tpu.pipeline_mode<synchronous>, transform_indices = @transform_1, window_bounds = array<i64: 1, 32>}, {pipeline_mode = #tpu.pipeline_mode<synchronous>, transform_indices = @transform_2, window_bounds = array<i64: 1, 32>}, {transform_indices = @transform_3, window_bounds = array<i64: 32, 128>}, {transform_indices = @transform_4, window_bounds = array<i64: 1, 128>}, {transform_indices = @transform_5, window_bounds = array<i64: 16, 128>}]} {
    %c0 = arith.constant 0 : index
    %c0_0 = arith.constant 0 : index
    %0 = vector.load %arg2[%c0, %c0_0] : memref<16x32xf32, #tpu.memory_space<vmem>>, vector<16x32xf32>
    %cst = arith.constant dense<0.000000e+00> : vector<16xf32>
    %1 = vector.multi_reduction <add>, %0, %cst [1] : vector<16x32xf32> to vector<16xf32>
    %2 = vector.shape_cast %1 : vector<16xf32> to vector<16x1xf32>
    %cst_1 = arith.constant 3.200000e+01 : f32
    %3 = vector.broadcast %cst_1 : f32 to vector<16x1xf32>
    %4 = arith.divf %2, %3 : vector<16x1xf32>
    %5 = vector.broadcast %4 : vector<16x1xf32> to vector<16x32xf32>
    %6 = arith.subf %0, %5 : vector<16x32xf32>
    %7 = arith.mulf %6, %6 : vector<16x32xf32>
    %cst_2 = arith.constant dense<0.000000e+00> : vector<16xf32>
    %8 = vector.multi_reduction <add>, %7, %cst_2 [1] : vector<16x32xf32> to vector<16xf32>
    %9 = vector.shape_cast %8 : vector<16xf32> to vector<16x1xf32>
    %cst_3 = arith.constant 3.200000e+01 : f32
    %10 = vector.broadcast %cst_3 : f32 to vector<16x1xf32>
    %11 = arith.divf %9, %10 : vector<16x1xf32>
    %cst_4 = arith.constant 9.99999974E-6 : f32
    %12 = vector.broadcast %cst_4 : f32 to vector<16x1xf32>
    %13 = arith.addf %11, %12 : vector<16x1xf32>
    %14 = math.rsqrt %13 : vector<16x1xf32>
    %c0_5 = arith.constant 0 : index
    %c0_6 = arith.constant 0 : index
    %15 = vector.load %arg3[%c0_5, %c0_6] : memref<1x32xf32, #tpu.memory_space<vmem>>, vector<1x32xf32>
    %c0_7 = arith.constant 0 : index
    %c0_8 = arith.constant 0 : index
    %16 = vector.load %arg4[%c0_7, %c0_8] : memref<1x32xf32, #tpu.memory_space<vmem>>, vector<1x32xf32>
    %17 = vector.broadcast %14 : vector<16x1xf32> to vector<16x32xf32>
    %18 = vector.broadcast %15 : vector<1x32xf32> to vector<16x32xf32>
    %19 = arith.mulf %17, %18 : vector<16x32xf32>
    %20 = arith.mulf %6, %19 : vector<16x32xf32>
    %21 = vector.broadcast %16 : vector<1x32xf32> to vector<16x32xf32>
    %22 = arith.addf %20, %21 : vector<16x32xf32>
    %c0_9 = arith.constant 0 : index
    %c0_10 = arith.constant 0 : index
    %23 = vector.load %arg5[%c0_9, %c0_10] : memref<32x128xf32, #tpu.memory_space<vmem>>, vector<32x128xf32>
    %cst_11 = arith.constant dense<0.000000e+00> : vector<16x128xf32>
    %24 = tpu.matmul %22, %23, %cst_11 {dimension_numbers = #tpu.dot_dimension_numbers<[1], [0], [0], [1], [0, 0, 1, 1], [], []>} : vector<16x32xf32>, vector<32x128xf32>, vector<16x128xf32> -> vector<16x128xf32>
    %c0_12 = arith.constant 0 : index
    %c0_13 = arith.constant 0 : index
    %25 = vector.load %arg6[%c0_12, %c0_13] : memref<1x128xf32, #tpu.memory_space<vmem>>, vector<1x128xf32>
    %26 = vector.broadcast %25 : vector<1x128xf32> to vector<16x128xf32>
    %27 = arith.addf %24, %26 : vector<16x128xf32>
    %c0_14 = arith.constant 0 : index
    %c0_15 = arith.constant 0 : index
    %28 = vector.load %arg7[%c0_14, %c0_15] : memref<16x128xf32, #tpu.memory_space<vmem>>, vector<16x128xf32>
    tpu.vector_store %arg7[%c0_14, %c0_15], %27 {strides = array<i32>} : memref<16x128xf32, #tpu.memory_space<vmem>>, vector<16x128xf32>,
    return
  }
  func.func @transform_0(%arg0: i32, %arg1: i32) -> (i32, i32) {
    %c0_i32 = arith.constant 0 : i32
    %c0_i32_0 = arith.constant 0 : i32
    return %arg0, %c0_i32 : i32, i32
  }
  func.func @transform_1(%arg0: i32, %arg1: i32) -> (i32, i32) {
    %c0_i32 = arith.constant 0 : i32
    %c0_i32_0 = arith.constant 0 : i32
    %c0_i32_1 = arith.constant 0 : i32
    return %c0_i32, %c0_i32_0 : i32, i32
  }
  func.func @transform_2(%arg0: i32, %arg1: i32) -> (i32, i32) {
    %c0_i32 = arith.constant 0 : i32
    %c0_i32_0 = arith.constant 0 : i32
    %c0_i32_1 = arith.constant 0 : i32
    return %c0_i32, %c0_i32_0 : i32, i32
  }
  func.func @transform_3(%arg0: i32, %arg1: i32) -> (i32, i32) {
    %c0_i32 = arith.constant 0 : i32
    %c0_i32_0 = arith.constant 0 : i32
    return %c0_i32, %arg1 : i32, i32
  }
  func.func @transform_4(%arg0: i32, %arg1: i32) -> (i32, i32) {
    %c0_i32 = arith.constant 0 : i32
    %c0_i32_0 = arith.constant 0 : i32
    return %c0_i32, %arg1 : i32, i32
  }
  func.func @transform_5(%arg0: i32, %arg1: i32) -> (i32, i32) {
    %c0_i32 = arith.constant 0 : i32
    return %arg0, %arg1 : i32, i32
  }
}

</mosaic_0001>

<bundles_post_ra>
// kernel: modality_projection.1
= control target key start
LH: loop header
LB: loop body
LE: loop exit
PB: predicated region body
PF: predicated region fallthrough
CT: control target
= control target key end

     0   :  { %vm22_vm0 = vcmask 261120   ;;  %v145_v4 = vmov 32.0   ;;  %s215_s0 = inlined_call_operand.vmem [shape: f32[16,32], index: 0, kind: input, shape index: {}]   ;;  %s216_s1 = inlined_call_operand.vmem [shape: f32[1,32], index: 1, kind: input, shape index: {}]   ;;  %s217_s2 = inlined_call_operand.vmem [shape: f32[1,32], index: 2, kind: input, shape index: {}]   ;;  %s218_s4 = inlined_call_operand.vmem [shape: f32[1,128], index: 4, kind: input, shape index: {}]   ;;  %s219_s3 = inlined_call_operand.vmem [shape: f32[32,128], index: 3, kind: input, shape index: {}]   ;;  %s220_s5 = inlined_call_operand.vmem [shape: f32[16,128], index: 5, kind: output, shape index: {}]  }
   0x1   :  { %v20_v0 = vld [vmem:[%s215_s0] sm:$0xff]  ;;  %v21_v2 = vld [vmem:[%s215_s0 + $0x8] sm:$0xff]  ;;  %139 = vrcp.f32 %v145_v4  ;;  %v89_v21 = vld [vmem:[%s219_s3 + $0x18] sm:$0xff] }
   0x2   :  { %v23_v1 = vsel %vm22_vm0, %v20_v0, 0.0  ;;  %v26_v3 = vsel %vm22_vm0, %v21_v2, 0.0  ;;  %112 = vmatpush.msra.mxu0 %v89_v21  ;;  %131 = vmatpush.msra.mxu1 %v89_v21  ;;  %v88_v22 = vld [vmem:[%s219_s3 + $0x10] sm:$0xff]  ;;  %v87_v23 = vld [vmem:[%s219_s3 + $0x8] sm:$0xff]  ;;  %v86_v24 = vld [vmem:[%s219_s3] sm:$0xff] }
   0x3   :  { %24 = vadd.xlane.f32.xlu0 %v23_v1  ;;  %v136_v37 = vld [vmem:[%s216_s1] ss:$0 sm:$0xff] }
   0x4   :  { %113 = vmatpush.msra.mxu0 %v88_v22  ;;  %132 = vmatpush.msra.mxu1 %v88_v22  ;;  %v137_v43 = vld [vmem:[%s217_s2] ss:$0 sm:$0xff] }
   0x5   :  { %v138_v53 = vld [vmem:[%s218_s4] ss:$0 sm:$0xff] }
   0x6   :  { %114 = vmatpush.msra.mxu0 %v87_v23  ;;  %133 = vmatpush.msra.mxu1 %v87_v23 }
   0x7   :  { %v140_v5 = vpop.eup %139 }
   0x8   :  { %v30_v6 = vmul.f32 32.0, %v140_v5  ;;  %vm34_vm1 = vweird.f32 %v140_v5  ;;  %115 = vmatpush.msra.mxu0 %v86_v24  ;;  %134 = vmatpush.msra.mxu1 %v86_v24 }
   0xa   :  { %v31_v7 = vsub.f32 1.0, %v30_v6 }
   0xb   :  { %27 = vadd.xlane.f32.xlu0 %v26_v3 }
   0xc   :  { %v32_v8 = vmul.f32 %v140_v5, %v31_v7 }
   0xe   :  { %v33_v9 = vadd.f32 %v140_v5, %v32_v8 }
  0x10   :  { %v35_v10 = vsel %vm34_vm1, %v140_v5, %v33_v9 }
  0x76   :  { %v25_v11 = vpop.xlane.xlu0 %24 }
  0x77   :  { %v36_v12 = vmul.f32 %v35_v10, %v25_v11 }
  0x79   :  { %v38_v13 = vsub.f32 %v20_v0, %v36_v12 }
  0x7b   :  { %v40_v14 = vmul.f32 %v38_v13, %v38_v13 }
  0x7d   :  { %v42_v15 = vsel %vm22_vm0, %v40_v14, 0.0 }
  0x7e   :  { %43 = vadd.xlane.f32.xlu1 %v42_v15  ;;  %v28_v16 = vpop.xlane.xlu0 %27 }
  0x7f   :  { %v37_v17 = vmul.f32 %v35_v10, %v28_v16 }
  0x81   :  { %v39_v18 = vsub.f32 %v21_v2, %v37_v17 }
  0x83   :  { %v41_v19 = vmul.f32 %v39_v18, %v39_v18 }
  0x85   :  { %v45_v20 = vsel %vm22_vm0, %v41_v19, 0.0 }
  0x86   :  { %46 = vadd.xlane.f32.xlu1 %v45_v20 }
  0xf1   :  { %v44_v25 = vpop.xlane.xlu1 %43 }
  0xf2   :  { %v48_v26 = vmul.f32 %v44_v25, %v35_v10 }
  0xf4   :  { %v50_v27 = vadd.f32 1e-05, %v48_v26 }
  0xf6   :  { %141 = vrsqrt.f32 %v50_v27  ;;  %vm58_vm3 = vweird.f32 %v50_v27 }
  0xf9   :  { %v47_v28 = vpop.xlane.xlu1 %46 }
  0xfa   :  { %v49_v29 = vmul.f32 %v47_v28, %v35_v10 }
  0xfc   :  { %v142_v30 = vpop.eup %141  ;;  %v51_v31 = vadd.f32 1e-05, %v49_v29 }
  0xfd   :  { %v53_v32 = vmul.f32 %v142_v30, %v50_v27  ;;  %vm59_vm2 = vweird.f32 %v142_v30 }
  0xfe   :  { %143 = vrsqrt.f32 %v51_v31  ;;  %vm60_vm4 = vmor %vm58_vm3, %vm59_vm2  ;;  %vm68_vm6 = vweird.f32 %v51_v31 }
  0xff   :  { %v54_v33 = vmul.f32 %v142_v30, %v53_v32 }
 0x101   :  { %v55_v34 = vmul.f32 0.5, %v54_v33 }
 0x103   :  { %v56_v35 = vsub.f32 1.5, %v55_v34 }
 0x104   :  { %v144_v36 = vpop.eup %143 }
 0x105   :  { %v57_v38 = vmul.f32 %v142_v30, %v56_v35  ;;  %v63_v39 = vmul.f32 %v144_v36, %v51_v31  ;;  %vm69_vm5 = vweird.f32 %v144_v36 }
 0x106   :  { %vm70_vm7 = vmor %vm68_vm6, %vm69_vm5 }
 0x107   :  { %v61_v40 = vsel %vm60_vm4, %v142_v30, %v57_v38  ;;  %v64_v41 = vmul.f32 %v144_v36, %v63_v39 }
 0x108   :  { %v77_v42 = vmul.f32 %v136_v37, %v61_v40 }
 0x109   :  { %v65_v44 = vmul.f32 0.5, %v64_v41 }
 0x10a   :  { %v79_v45 = vmul.f32 %v77_v42, %v38_v13 }
 0x10b   :  { %v66_v46 = vsub.f32 1.5, %v65_v44 }
 0x10c   :  { %v84_v47 = vadd.f32 %v137_v43, %v79_v45 }
 0x10d   :  { %v67_v48 = vmul.f32 %v144_v36, %v66_v46 }
 0x10e   :  { %129 = vmatmul.msk.f32.vlgmr.msra.gmra.mxu0 %vm22_vm0, %v84_v47 }
 0x10f   :  { %v71_v49 = vsel %vm70_vm7, %v144_v36, %v67_v48 }
 0x110   :  { %v78_v50 = vmul.f32 %v136_v37, %v71_v49 }
 0x112   :  { %v80_v51 = vmul.f32 %v78_v50, %v39_v18 }
 0x114   :  { %v85_v52 = vadd.f32 %v137_v43, %v80_v51 }
 0x116   :  { %130 = vmatmul.msk.f32.vlgmr.msra.gmra.mxu1 %vm22_vm0, %v85_v52 }
 0x18b   :  { %v117_v54 = vpop.f32.mrf.mxu0 }
 0x18c   :  { %v118_v55 = vadd.f32 %v138_v53, %v117_v54 }
 0x18e   :  { %123 = vst [vmem:[%s220_s5] sm:$0xff] %v118_v55 }
 0x193   :  { %v120_v56 = vpop.f32.mrf.mxu1 }
 0x194   :  { %v121_v57 = vadd.f32 %v138_v53, %v120_v56 }
 0x196   :  { %124 = vst [vmem:[%s220_s5 + $0x8] sm:$0xff] %v121_v57 }

</bundles_post_ra>
